<compile_context>
chip_gen: v5e
topology: v5e:2x2
jax: 0.10.0
libtpu: 0.0.40
codegen_flags: <defaults>
</compile_context>

<pallas_src>
import functools

import jax
import jax.numpy as jnp
from jax.experimental import pallas as pl
from jax.experimental.pallas import tpu as pltpu


# --------------------------- image normalization -----------------------------

def _normalize_kernel(x_ref, o_ref):
    # 2 * (x / 255) - 1, constant-folded; cast happens in VMEM (input may be
    # bf16 / u8-range), so the HBM read stream stays narrow.
    o_ref[...] = x_ref[...].astype(jnp.float32) * (2.0 / 255.0) - 1.0


def normalize_image(x, *, row_tile=512):
    """2*(x/255)-1 for NCHW images of any dtype; returns float32."""
    n, c, h, w = x.shape
    rows = n * c * h
    x2 = x.reshape(rows, w)                      # free reshape (contiguous)
    tr = rows if rows <= row_tile else row_tile  # 512 is a multiple of 8/16/32
    out = pl.pallas_call(
        _normalize_kernel,
        out_shape=jax.ShapeDtypeStruct((rows, w), jnp.float32),
        grid=(pl.cdiv(rows, tr),),
        in_specs=[pl.BlockSpec((tr, w), lambda i: (i, 0))],
        out_specs=pl.BlockSpec((tr, w), lambda i: (i, 0)),
        compiler_params=pltpu.CompilerParams(dimension_semantics=("parallel",)),
    )(x2)
    return out.reshape(n, c, h, w)


# --------------------------- 2x2 average pooling ------------------------------

def _avgpool_kernel(x_ref, p_ref, o_ref):
    # x_ref: (TR, 2*w) -- each row is [input row 2y | input row 2y+1]
    # p_ref: (w, wo)   -- constant pooling matrix, P[k, j] = 0.25 if k//2 == j
    w = p_ref.shape[0]
    a = x_ref[:, :w].astype(jnp.float32)   # even input rows
    b = x_ref[:, w:].astype(jnp.float32)   # odd input rows
    o_ref[...] = jnp.dot(a + b, p_ref[...],
                         preferred_element_type=jnp.float32).astype(o_ref.dtype)


def avg_pool2d_2x2(x, *, row_tile=512):
    """F.avg_pool2d(x, 2, stride=2) for NCHW input with even H, W."""
    n, c, h, w = x.shape
    ho, wo = h // 2, w // 2
    rows = n * c * ho
    # Free reshape: row r of x2 concatenates input rows (2y, 2y+1) of one
    # (n, c) slab along lanes -- no XLA transpose / extra HBM round trip.
    x2 = x.reshape(rows, 2 * w)
    pool = ((jnp.arange(w)[:, None] // 2) ==
            jnp.arange(wo)[None, :]).astype(jnp.float32) * 0.25
    tr = rows if rows <= row_tile else row_tile
    out = pl.pallas_call(
        _avgpool_kernel,
        out_shape=jax.ShapeDtypeStruct((rows, wo), x.dtype),
        grid=(pl.cdiv(rows, tr),),
        in_specs=[pl.BlockSpec((tr, 2 * w), lambda i: (i, 0)),
                  pl.BlockSpec((w, wo), lambda i: (0, 0))],   # resident constant
        out_specs=pl.BlockSpec((tr, wo), lambda i: (i, 0)),
        compiler_params=pltpu.CompilerParams(dimension_semantics=("parallel",)),
    )(x2, pool)
    return out.reshape(n, c, ho, wo)


# ----------------------- learned convex flow upsampling -----------------------

def _upflow_kernel(shift_ref, mask_ref, o_ref, *, d2):
    # shift_ref: (1, 18, th, w)      channel = 2*k + c  (k: unfold tap, c: x/y)
    # mask_ref : (1, 9*d2, th, w)    raw mask logits (bf16 or f32)
    # o_ref    : (1, 2*d2, th, w)    convex combination per sub-pixel
    #
    # Softmax over the 9 taps expressed as UN-normalized accumulation plus a
    # single reciprocal of the tap-sum (convex combination => identical).
    mmax = mask_ref[0, 0:d2].astype(jnp.float32)                 # (d2, th, w)
    for k in range(1, 9):
        mmax = jnp.maximum(mmax, mask_ref[0, k * d2:(k + 1) * d2]
                           .astype(jnp.float32))

    ssum = jnp.zeros_like(mmax)
    acc_x = jnp.zeros_like(mmax)
    acc_y = jnp.zeros_like(mmax)
    for k in range(9):
        e = jnp.exp(mask_ref[0, k * d2:(k + 1) * d2].astype(jnp.float32) - mmax)
        ssum = ssum + e
        acc_x = acc_x + e * shift_ref[0, 2 * k + 0]              # (th,w) bcast
        acc_y = acc_y + e * shift_ref[0, 2 * k + 1]

    inv = pl.reciprocal(ssum, approx=True)       # EUP estimate ...
    inv = inv * (2.0 - ssum * inv)               # ... + 1 Newton step (~f32)
    o_ref[0, 0:d2] = (acc_x * inv).astype(o_ref.dtype)
    o_ref[0, d2:2 * d2] = (acc_y * inv).astype(o_ref.dtype)


def learned_upflow(flow, mask, df, *, h_tile=16):
    """flow: (n, 2, h, w), mask: (n, 9*df*df, h, w) -> (n, 2, df*h, df*w)."""
    n, _, h, w = flow.shape
    d2 = df * df

    # Pre-shift the (tiny) coarse flow: 9 zero-padded (dy, dx) neighbour
    # planes of df*flow, channel-packed as (n, 18, h, w).  Keeps the hot loop
    # free of lane-offset slicing; negligible HBM next to the mask stream.
    fp = jnp.pad(df * flow.astype(jnp.float32), ((0, 0), (0, 0), (1, 1), (1, 1)))
    shifts = jnp.stack([fp[:, :, dy:dy + h, dx:dx + w]
                        for dy in range(3) for dx in range(3)], axis=1)
    shifts = shifts.reshape(n, 18, h, w)

    th = h if h <= h_tile else h_tile            # 16 is a multiple of 8
    grid = (n, pl.cdiv(h, th))

    # Explicit scoped-VMEM budget: 2x double-buffered blocks + f32 temporaries.
    mask_blk = 9 * d2 * th * w * mask.dtype.itemsize
    shift_blk = 18 * th * w * 4
    out_blk = 2 * d2 * th * w * 4
    work = 8 * d2 * th * w * 4
    vmem_limit = int(2 * (mask_blk + shift_blk + out_blk) + work + (4 << 20))
    vmem_limit = min(max(vmem_limit, 32 << 20), 64 << 20)

    out = pl.pallas_call(
        functools.partial(_upflow_kernel, d2=d2),
        out_shape=jax.ShapeDtypeStruct((n, 2 * d2, h, w), jnp.float32),
        grid=grid,
        in_specs=[
            pl.BlockSpec((1, 18, th, w), lambda b, i: (b, 0, i, 0)),
            pl.BlockSpec((1, 9 * d2, th, w), lambda b, i: (b, 0, i, 0)),
        ],
        out_specs=pl.BlockSpec((1, 2 * d2, th, w), lambda b, i: (b, 0, i, 0)),
        compiler_params=pltpu.CompilerParams(
            dimension_semantics=("parallel", "parallel"),
            vmem_limit_bytes=vmem_limit),
    )(shifts, mask)

    # TODO(synk): pixel shuffle kept in XLA; fusing it in-kernel would need a
    # 5-D minor-dim transpose whose Mosaic lowering is not guaranteed.
    up = out.reshape(n, 2, df, df, h, w).transpose(0, 1, 4, 2, 5, 3)
    return up.reshape(n, 2, df * h, df * w)


# ------------------------------ plain-JAX glue ---------------------------------

def coords_grid(n, h, w):
    ys, xs = jnp.meshgrid(jnp.arange(h, dtype=jnp.float32),
                          jnp.arange(w, dtype=jnp.float32), indexing="ij")
    coords = jnp.stack([xs, ys], axis=0)                  # (2, h, w), x first
    return jnp.broadcast_to(coords[None], (n, 2, h, w))


def initialize_flow(img, downsample_factor):
    n, _, h, w = img.shape
    c0 = coords_grid(n, h // downsample_factor, w // downsample_factor)
    c1 = coords_grid(n, h // downsample_factor, w // downsample_factor)
    return c0, c1


def learned_upflow_ref(flow, mask, df):
    """Pure-JAX reference replicating the PyTorch learned_upflow exactly."""
    n, _, h, w = flow.shape
    m = mask.reshape(n, 1, 9, df, df, h, w)
    m = jax.nn.softmax(m, axis=2)
    fp = jnp.pad(df * flow, ((0, 0), (0, 0), (1, 1), (1, 1)))
    cols = jnp.stack([fp[:, :, dy:dy + h, dx:dx + w]
                      for dy in range(3) for dx in range(3)], axis=2)
    up = jnp.sum(m * cols[:, :, :, None, None, :, :], axis=2)
    up = up.transpose(0, 1, 4, 2, 5, 3).reshape(n, 2, df * h, df * w)
    return up


# ----------------------------------- main --------------------------------------

if __name__ == "__main__":
    key = jax.random.PRNGKey(0)
    k1, k2, k3, k4, k5 = jax.random.split(key, 5)

    N, H, W = 2, 32, 32
    DF = 8                     # downsample_factor
    FC = 8                     # small stand-in for feature_channels=128
    h8, w8 = H // DF, W // DF

    # raw 0..255 images stored as bf16 (exact for 8-bit values); the Pallas
    # kernel does the widening cast in VMEM, halving the input HBM stream.
    image1 = jax.random.randint(k1, (N, 3, H, W), 0, 256, jnp.int32).astype(jnp.bfloat16)
    image2 = jax.random.randint(k2, (N, 3, H, W), 0, 256, jnp.int32).astype(jnp.bfloat16)

    # Pallas: image normalization 2*(x/255)-1
    img1n = normalize_image(image1)
    img2n = normalize_image(image2)

    # TODO(synk): FeatureNet / ContextNet / Attention1D / AlternateCorr1D /
    # BasicUpdateBlock definitions are not provided in the module source, so
    # their internals cannot be reproduced; deterministic synthetic feature /
    # update-block tensors drive the defined Pallas stages below.
    fmap2 = jax.random.normal(k3, (N, FC, h8, w8), jnp.float32)

    # Pallas: F.avg_pool2d(fmap2, 2, stride=2) pyramid level
    fmap2_d1 = avg_pool2d_2x2(fmap2)

    # flow initialization (coords0 / coords1 grids at 1/8 resolution)
    coords0, coords1 = initialize_flow(image1, DF)
    delta_flow = 0.1 * jax.random.normal(k4, (N, 2, h8, w8), jnp.float32)
    coords1 = coords1 + delta_flow
    flow = coords1 - coords0

    # update-block mask output (bf16 stream into the upsampler)
    up_mask = (0.25 * jax.random.normal(
        k5, (N, 9 * DF * DF, h8, w8), jnp.float32)).astype(jnp.bfloat16)

    # Pallas: learned convex-combination flow upsampling
    flow_up = learned_upflow(flow, up_mask, DF)

    jax.block_until_ready((img1n, img2n, fmap2_d1, flow_up))

    # -------- correctness checks against pure-JAX references --------
    # upflow: reference consumes the same bf16 mask; 1e-3 tolerance covers the
    # Newton-refined approximate reciprocal.
    ref_up = learned_upflow_ref(flow, up_mask.astype(jnp.float32), DF)
    assert flow_up.shape == (N, 2, H, W)
    assert float(jnp.max(jnp.abs(flow_up - ref_up))) < 1e-3

    # avg-pool: MXU matmul against the 0.25 pooling matrix may use bf16 passes
    # at default precision, so the tolerance is loose but still discriminative.
    ref_pool = 0.25 * (fmap2[:, :, 0::2, 0::2] + fmap2[:, :, 0::2, 1::2]
                       + fmap2[:, :, 1::2, 0::2] + fmap2[:, :, 1::2, 1::2])
    assert fmap2_d1.shape == (N, FC, h8 // 2, w8 // 2)
    assert float(jnp.max(jnp.abs(fmap2_d1 - ref_pool))) < 2e-2

    ref_norm = 2.0 * (image1.astype(jnp.float32) / 255.0) - 1.0
    assert float(jnp.max(jnp.abs(img1n - ref_norm))) < 1e-5

    print("KERNEL_OK")
</pallas_src>

<mosaic_0001>
module attributes {stable_mosaic.version = 11 : i64} {
  func.func @_normalize_kernel(%arg0: i32, %arg1: memref<192x32xbf16, #tpu.memory_space<vmem>>, %arg2: memref<192x32xf32, #tpu.memory_space<vmem>>) attributes {dimension_semantics = [#tpu.dimension_semantics<parallel>], iteration_bounds = array<i64: 1>, scalar_prefetch = 0 : i64, scratch_operands = 0 : i64, tpu.core_type = #tpu.core_type<tc>, window_params = [{transform_indices = @transform_0, window_bounds = array<i64: 192, 32>}, {transform_indices = @transform_1, window_bounds = array<i64: 192, 32>}]} {
    %c0 = arith.constant 0 : index
    %c0_0 = arith.constant 0 : index
    %0 = vector.load %arg1[%c0, %c0_0] : memref<192x32xbf16, #tpu.memory_space<vmem>>, vector<192x32xbf16>
    %1 = arith.extf %0 : vector<192x32xbf16> to vector<192x32xf32>
    %cst = arith.constant 0.00784313772 : f32
    %2 = vector.broadcast %cst : f32 to vector<192x32xf32>
    %3 = arith.mulf %1, %2 : vector<192x32xf32>
    %cst_1 = arith.constant 1.000000e+00 : f32
    %4 = vector.broadcast %cst_1 : f32 to vector<192x32xf32>
    %5 = arith.subf %3, %4 : vector<192x32xf32>
    %c0_2 = arith.constant 0 : index
    %c0_3 = arith.constant 0 : index
    %6 = vector.load %arg2[%c0_2, %c0_3] : memref<192x32xf32, #tpu.memory_space<vmem>>, vector<192x32xf32>
    tpu.vector_store %arg2[%c0_2, %c0_3], %5 {strides = array<i32>} : memref<192x32xf32, #tpu.memory_space<vmem>>, vector<192x32xf32>,
    return
  }
  func.func @transform_0(%arg0: i32) -> (i32, i32) {
    %c0_i32 = arith.constant 0 : i32
    %c0_i32_0 = arith.constant 0 : i32
    return %arg0, %c0_i32 : i32, i32
  }
  func.func @transform_1(%arg0: i32) -> (i32, i32) {
    %c0_i32 = arith.constant 0 : i32
    %c0_i32_0 = arith.constant 0 : i32
    return %arg0, %c0_i32 : i32, i32
  }
}

</mosaic_0001>

<bundles_post_ra>
// kernel: tpu_custom_call.1
= control target key start
LH: loop header
LB: loop body
LE: loop exit
PB: predicated region body
PF: predicated region fallthrough
CT: control target
= control target key end

     0   :  { %vm104_vm0 = vcmask 261120   ;;  %s358_s0 = inlined_call_operand.vmem [shape: bf16[192,32], index: 0, kind: input, shape index: {}]   ;;  %s359_s1 = inlined_call_operand.vmem [shape: f32[192,32], index: 1, kind: output, shape index: {}]  }
   0x1   :  { %v158_v0 = vld [vmem:[%s358_s0] sm:$0xff]   ;;  %v205_v1 = vld [vmem:[%s358_s0 + $0x8] sm:$0xff]   ;;  %v206_v2 = vld [vmem:[%s358_s0 + $0x10] sm:$0xff]  }
   0x2   :  { %v159_v3 = vunpack.c.l.bf16 %v158_v0  ;;  %v160_v4 = vunpack.c.h.bf16 %v158_v0  ;;  %v163_v5 = vunpack.c.l.bf16 %v205_v1  ;;  %v164_v6 = vunpack.c.h.bf16 %v205_v1  ;;  %v207_v7 = vld [vmem:[%s358_s0 + $0x18] sm:$0xff]   ;;  %v208_v8 = vld [vmem:[%s358_s0 + $0x20] sm:$0xff]   ;;  %v209_v13 = vld [vmem:[%s358_s0 + $0x28] sm:$0xff]  }
   0x3   :  { %v167_v9 = vunpack.c.l.bf16 %v206_v2  ;;  %v168_v10 = vunpack.c.h.bf16 %v206_v2  ;;  %v171_v11 = vunpack.c.l.bf16 %v207_v7  ;;  %v172_v12 = vunpack.c.h.bf16 %v207_v7  ;;  %v210_v26 = vld [vmem:[%s358_s0 + $0x30] sm:$0xff]   ;;  %v211_v29 = vld [vmem:[%s358_s0 + $0x38] sm:$0xff]   ;;  %v212_v38 = vld [vmem:[%s358_s0 + $0x40] sm:$0xff]  }
   0x4   :  { %v56_v14 = vmul.f32 0.007843138, %v159_v3  ;;  %v57_v15 = vmul.f32 0.007843138, %v160_v4  ;;  %v58_v16 = vmul.f32 0.007843138, %v163_v5  ;;  %v175_v17 = vunpack.c.l.bf16 %v208_v8 }
   0x5   :  { %v59_v18 = vmul.f32 0.007843138, %v164_v6  ;;  %v60_v19 = vmul.f32 0.007843138, %v167_v9  ;;  %v61_v20 = vmul.f32 0.007843138, %v168_v10  ;;  %v176_v21 = vunpack.c.h.bf16 %v208_v8 }
   0x6   :  { %v133_v22 = vadd.f32 -1.0, %v56_v14  ;;  %v134_v23 = vadd.f32 -1.0, %v57_v15  ;;  %v135_v24 = vadd.f32 -1.0, %v58_v16  ;;  %v62_v25 = vmul.f32 0.007843138, %v171_v11  ;;  %v213_v45 = vld [vmem:[%s358_s0 + $0x48] sm:$0xff]  }
   0x7   :  { %v136_v27 = vadd.f32 -1.0, %v59_v18  ;;  %v63_v28 = vmul.f32 0.007843138, %v172_v12  ;;  %v137_v30 = vadd.f32 -1.0, %v60_v19  ;;  %v138_v31 = vadd.f32 -1.0, %v61_v20  ;;  %v214_v52 = vld [vmem:[%s358_s0 + $0x50] sm:$0xff]  }
   0x8   :  { %105 = vst.msk [vmem:[%s359_s1] sm:$0xff] %vm104_vm0, %v133_v22  ;;  %v64_v32 = vmul.f32 0.007843138, %v175_v17  ;;  %v179_v33 = vunpack.c.l.bf16 %v209_v13  ;;  %v65_v34 = vmul.f32 0.007843138, %v176_v21  ;;  %v180_v35 = vunpack.c.h.bf16 %v209_v13  ;;  %v215_v59 = vld [vmem:[%s358_s0 + $0x58] sm:$0xff]  }
   0x9   :  { %106 = vst.msk [vmem:[%s359_s1 + $0x8] sm:$0xff] %vm104_vm0, %v134_v23  ;;  %v183_v36 = vunpack.c.l.bf16 %v210_v26  ;;  %v184_v37 = vunpack.c.h.bf16 %v210_v26  ;;  %v139_v39 = vadd.f32 -1.0, %v62_v25  ;;  %v187_v41 = vunpack.c.l.bf16 %v211_v29 }
   0xa   :  { %107 = vst.msk [vmem:[%s359_s1 + $0x10] sm:$0xff] %vm104_vm0, %v135_v24  ;;  %v66_v40 = vmul.f32 0.007843138, %v179_v33  ;;  %v140_v42 = vadd.f32 -1.0, %v63_v28  ;;  %v67_v43 = vmul.f32 0.007843138, %v180_v35  ;;  %v188_v44 = vunpack.c.h.bf16 %v211_v29 }
   0xb   :  { %108 = vst.msk [vmem:[%s359_s1 + $0x18] sm:$0xff] %vm104_vm0, %v136_v27  ;;  %v141_v46 = vadd.f32 -1.0, %v64_v32  ;;  %v68_v47 = vmul.f32 0.007843138, %v183_v36  ;;  %v191_v48 = vunpack.c.l.bf16 %v212_v38  ;;  %v142_v49 = vadd.f32 -1.0, %v65_v34 }
   0xc   :  { %109 = vst.msk [vmem:[%s359_s1 + $0x20] sm:$0xff] %vm104_vm0, %v137_v30  ;;  %v69_v50 = vmul.f32 0.007843138, %v184_v37  ;;  %v192_v51 = vunpack.c.h.bf16 %v212_v38  ;;  %v143_v53 = vadd.f32 -1.0, %v66_v40  ;;  %v70_v54 = vmul.f32 0.007843138, %v187_v41 }
   0xd   :  { %110 = vst.msk [vmem:[%s359_s1 + $0x28] sm:$0xff] %vm104_vm0, %v138_v31  ;;  %v195_v55 = vunpack.c.l.bf16 %v213_v45  ;;  %v144_v56 = vadd.f32 -1.0, %v67_v43  ;;  %v71_v57 = vmul.f32 0.007843138, %v188_v44  ;;  %v196_v58 = vunpack.c.h.bf16 %v213_v45 }
   0xe   :  { %111 = vst.msk [vmem:[%s359_s1 + $0x30] sm:$0xff] %vm104_vm0, %v139_v39  ;;  %v145_v60 = vadd.f32 -1.0, %v68_v47  ;;  %v72_v61 = vmul.f32 0.007843138, %v191_v48  ;;  %v199_v62 = vunpack.c.l.bf16 %v214_v52  ;;  %v146_v63 = vadd.f32 -1.0, %v69_v50 }
   0xf   :  { %112 = vst.msk [vmem:[%s359_s1 + $0x38] sm:$0xff] %vm104_vm0, %v140_v42  ;;  %v73_v0 = vmul.f32 0.007843138, %v192_v51  ;;  %v200_v1 = vunpack.c.h.bf16 %v214_v52  ;;  %v147_v2 = vadd.f32 -1.0, %v70_v54  ;;  %v74_v3 = vmul.f32 0.007843138, %v195_v55 }
  0x10   :  { %113 = vst.msk [vmem:[%s359_s1 + $0x40] sm:$0xff] %vm104_vm0, %v141_v46  ;;  %v203_v4 = vunpack.c.l.bf16 %v215_v59  ;;  %v148_v5 = vadd.f32 -1.0, %v71_v57  ;;  %v75_v6 = vmul.f32 0.007843138, %v196_v58  ;;  %v204_v7 = vunpack.c.h.bf16 %v215_v59 }
  0x11   :  { %114 = vst.msk [vmem:[%s359_s1 + $0x48] sm:$0xff] %vm104_vm0, %v142_v49  ;;  %v149_v8 = vadd.f32 -1.0, %v72_v61  ;;  %v76_v9 = vmul.f32 0.007843138, %v199_v62  ;;  %v150_v10 = vadd.f32 -1.0, %v73_v0  ;;  %v151_v12 = vadd.f32 -1.0, %v74_v3 }
  0x12   :  { %115 = vst.msk [vmem:[%s359_s1 + $0x50] sm:$0xff] %vm104_vm0, %v143_v53  ;;  %v77_v11 = vmul.f32 0.007843138, %v200_v1  ;;  %v78_v13 = vmul.f32 0.007843138, %v203_v4  ;;  %v152_v14 = vadd.f32 -1.0, %v75_v6 }
  0x13   :  { %116 = vst.msk [vmem:[%s359_s1 + $0x58] sm:$0xff] %vm104_vm0, %v144_v56  ;;  %v79_v15 = vmul.f32 0.007843138, %v204_v7  ;;  %v153_v16 = vadd.f32 -1.0, %v76_v9 }
  0x14   :  { %117 = vst.msk [vmem:[%s359_s1 + $0x60] sm:$0xff] %vm104_vm0, %v145_v60  ;;  %v154_v17 = vadd.f32 -1.0, %v77_v11  ;;  %v155_v18 = vadd.f32 -1.0, %v78_v13 }
  0x15   :  { %118 = vst.msk [vmem:[%s359_s1 + $0x68] sm:$0xff] %vm104_vm0, %v146_v63  ;;  %v156_v19 = vadd.f32 -1.0, %v79_v15 }
  0x16   :  { %119 = vst.msk [vmem:[%s359_s1 + $0x70] sm:$0xff] %vm104_vm0, %v147_v2 }
  0x17   :  { %120 = vst.msk [vmem:[%s359_s1 + $0x78] sm:$0xff] %vm104_vm0, %v148_v5 }
  0x18   :  { %121 = vst.msk [vmem:[%s359_s1 + $0x80] sm:$0xff] %vm104_vm0, %v149_v8 }
  0x19   :  { %122 = vst.msk [vmem:[%s359_s1 + $0x88] sm:$0xff] %vm104_vm0, %v150_v10 }
  0x1a   :  { %123 = vst.msk [vmem:[%s359_s1 + $0x90] sm:$0xff] %vm104_vm0, %v151_v12 }
  0x1b   :  { %124 = vst.msk [vmem:[%s359_s1 + $0x98] sm:$0xff] %vm104_vm0, %v152_v14 }
  0x1c   :  { %125 = vst.msk [vmem:[%s359_s1 + $0xa0] sm:$0xff] %vm104_vm0, %v153_v16 }
  0x1d   :  { %126 = vst.msk [vmem:[%s359_s1 + $0xa8] sm:$0xff] %vm104_vm0, %v154_v17 }
  0x1e   :  { %127 = vst.msk [vmem:[%s359_s1 + $0xb0] sm:$0xff] %vm104_vm0, %v155_v18 }
  0x1f   :  { %128 = vst.msk [vmem:[%s359_s1 + $0xb8] sm:$0xff] %vm104_vm0, %v156_v19 }

</bundles_post_ra>
